<compile_context>
chip_gen: v7x
topology: tpu7x:2x2x1
jax: 0.10.0
libtpu: 0.0.40
codegen_flags: <defaults>
</compile_context>

<pallas_src>
import functools

import jax
import jax.numpy as jnp
from jax import lax
from jax.experimental import pallas as pl
from jax.experimental.pallas import tpu as pltpu


DEFAULT_BLOCK_C = 384  # concept-tile width (multiple of 128); 660 -> 2 tiles of 384


def _sigmoid_linear_kernel(x_ref, w_ref, b_ref, o_ref):
    """Full path: o = sigmoid(x @ w.T + b) for one concept tile.

    x_ref: (B, F)        f32  activations (resident across the whole grid)
    w_ref: (block_c, F)  bf16 weight tile in PyTorch (out, in) layout -- no transpose
    b_ref: (1, block_c)  f32  bias tile
    o_ref: (B, block_c)  f32  sigmoid scores (last tile's tail cols masked by Pallas)
    """
    x_bf16 = x_ref[...].astype(jnp.bfloat16)          # in-kernel cast, hidden in DMA slack
    z = lax.dot_general(
        x_bf16, w_ref[...],
        dimension_numbers=(((1,), (1,)), ((), ())),    # contract F of both == trans_b
        preferred_element_type=jnp.float32,
    )
    z = z + b_ref[...]                                 # broadcast (1, block_c) over batch
    o_ref[...] = (1.0 / (1.0 + jnp.exp(-z))).astype(o_ref.dtype)


def _sigmoid_row_kernel(cid_ref, x_ref, w_ref, b_ref, o_ref):
    """Indexed (IndexLinear id) path: o = sigmoid(x @ W[id].T + b[id]), shape (B, 1).

    cid_ref: (1,)       int32 in SMEM (scalar prefetch)
    x_ref:   (B, F)     f32   activations
    w_ref:   (8, F)     bf16  the 8-row weight block containing row `id` (DMA'd by index_map)
    b_ref:   (1, C_pad) f32   full bias table in SMEM (scalar read at dynamic id)
    o_ref:   (B, 1)     f32
    """
    cid = cid_ref[0]
    row = cid % 8                                       # offset of the concept row in the block
    # Select the row with a mask + sublane reduce (pure VPU/XLU, no MXU, no dynamic slice).
    row_ids = lax.broadcasted_iota(jnp.int32, w_ref.shape, 0)          # (8, F)
    w_row = jnp.sum(
        jnp.where(row_ids == row, w_ref[...].astype(jnp.float32), 0.0),
        axis=0, keepdims=True)                                         # (1, F) f32
    # f32 multiply + lane reduce: the N=1 contraction never touches the MXU.
    z = jnp.sum(x_ref[...].astype(jnp.float32) * w_row, axis=-1, keepdims=True)  # (B, 1)
    z = z + b_ref[0, cid]                                               # SMEM scalar bias
    o_ref[...] = (1.0 / (1.0 + jnp.exp(-z))).astype(o_ref.dtype)


def prepare_params(weight, bias, *, block_c=DEFAULT_BLOCK_C, matmul_dtype=jnp.bfloat16):
    """One-time parameter prep (do this at load time, NOT per forward call).

    Casts the weight to bf16 and pads the concept axis up to a multiple of the
    concept-tile size so the hot path streams the weight exactly once, tile by tile.
    """
    c, f = weight.shape
    c_pad = ((c + block_c - 1) // block_c) * block_c
    w_p = jnp.zeros((c_pad, f), matmul_dtype).at[:c, :].set(weight.astype(matmul_dtype))
    b_p = jnp.zeros((1, c_pad), jnp.float32).at[0, :c].set(bias.astype(jnp.float32))
    return w_p, b_p


@functools.partial(jax.jit, static_argnames=("num_concepts", "block_c"))
def single_sigmoid_forward(x, w_p, b_p, *, num_concepts, concept_id=None,
                           block_c=DEFAULT_BLOCK_C):
    """Pallas forward of SingleSigmoidFeatureClassifier.

    x:            (B, F) float activations (kept f32 in the wrapper; cast happens in-kernel)
    w_p, b_p:     padded params from prepare_params(): (C_pad, F) bf16, (1, C_pad) f32
    num_concepts: true (unpadded) concept count C (static)
    concept_id:   optional *traced* scalar -> (B, 1) score for that concept (IndexLinear
                  path); otherwise (B, C) scores for all concepts.
    """
    b, f = x.shape
    c_pad = w_p.shape[0]

    if concept_id is not None:
        # IndexLinear path: one pallas_call; concept_id is scalar-prefetched into SMEM and
        # drives the weight-block index_map (only the ~16 KB block holding the row is DMA'd).
        # Clamp preserves the old dynamic_slice clamping for out-of-range ids.
        cid = jnp.clip(jnp.asarray(concept_id, jnp.int32).reshape((1,)),
                       0, num_concepts - 1)
        grid_spec = pltpu.PrefetchScalarGridSpec(
            num_scalar_prefetch=1,
            grid=(1,),
            in_specs=[
                pl.BlockSpec((b, f), lambda i, cid: (0, 0)),             # x, whole
                pl.BlockSpec((8, f), lambda i, cid: (cid[0] // 8, 0)),   # 8-row weight block
                pl.BlockSpec(memory_space=pltpu.MemorySpace.SMEM),       # full bias table
            ],
            out_specs=pl.BlockSpec((b, 1), lambda i, cid: (0, 0)),
        )
        return pl.pallas_call(
            _sigmoid_row_kernel,
            out_shape=jax.ShapeDtypeStruct((b, 1), x.dtype),
            grid_spec=grid_spec,
            compiler_params=pltpu.CompilerParams(
                dimension_semantics=("arbitrary",)),
        )(cid, x, w_p, b_p)

    # Full path: tile the concept axis. Each grid step DMAs one (block_c, F) bf16 weight
    # tile (double-buffered against the matmul+sigmoid); the axis is "parallel" so v7x
    # shards one tile per TensorCore. The output is declared unpadded (B, C): Pallas
    # masks the tail columns of the last tile's store, so no wrapper slice is needed.
    # NOTE: if callers score many concept_ids per input, batch the ids and reuse this
    # tiled path (or a row-gather grid) instead of one indexed call per id.
    assert block_c % 128 == 0
    grid_c = pl.cdiv(num_concepts, block_c)
    assert c_pad >= grid_c * block_c, "prepare_params block_c must match forward block_c"
    return pl.pallas_call(
        _sigmoid_linear_kernel,
        out_shape=jax.ShapeDtypeStruct((b, num_concepts), x.dtype),
        grid=(grid_c,),
        in_specs=[
            pl.BlockSpec((b, f), lambda j: (0, 0)),           # x: resident, fetched once
            pl.BlockSpec((block_c, f), lambda j: (j, 0)),     # weight tile, (C, F) layout
            pl.BlockSpec((1, block_c), lambda j: (0, j)),     # bias tile
        ],
        out_specs=pl.BlockSpec((b, block_c), lambda j: (0, j)),
        compiler_params=pltpu.CompilerParams(
            dimension_semantics=("parallel",),
        ),
    )(x, w_p, b_p)


if __name__ == "__main__":
    # Module defaults: IndexLinear(1024, 660) when feature is None.
    B = 8
    IN_FEATURES = 1024
    CONCEPTS = 660

    key = jax.random.PRNGKey(0)
    kx, kw, kb = jax.random.split(key, 3)

    # Deterministic init mimicking nn.Linear: U(-1/sqrt(F), 1/sqrt(F)).
    bound = 1.0 / (IN_FEATURES ** 0.5)
    weight = jax.random.uniform(
        kw, (CONCEPTS, IN_FEATURES), jnp.float32, minval=-bound, maxval=bound)
    bias = jax.random.uniform(
        kb, (CONCEPTS,), jnp.float32, minval=-bound, maxval=bound)
    x = jax.random.normal(kx, (B, IN_FEATURES), jnp.float32)

    # One-time param prep: bf16 weights, concept axis padded 660 -> 768 (2 x 384 tiles).
    w_p, b_p = prepare_params(weight, bias)

    # Full forward (id=None): (B, 660) sigmoid scores over all concepts.
    out_full = single_sigmoid_forward(x, w_p, b_p, num_concepts=CONCEPTS)
    # Indexed forward (id=c_i): (B, 1). concept_id is traced -> no recompile per id.
    out_c3 = single_sigmoid_forward(x, w_p, b_p, num_concepts=CONCEPTS, concept_id=3)
    out_c7 = single_sigmoid_forward(x, w_p, b_p, num_concepts=CONCEPTS, concept_id=7)

    jax.block_until_ready((out_full, out_c3, out_c7))

    # Plain-JAX f32 reference. Tolerance loosened for the intentional bf16 weight
    # (and, on the full path, activation) cast.
    ref_full = jax.nn.sigmoid(x @ weight.T + bias)
    ref_c3 = jax.nn.sigmoid(x @ weight[3:4].T + bias[3:4])
    ref_c7 = jax.nn.sigmoid(x @ weight[7:8].T + bias[7:8])

    assert out_full.shape == (B, CONCEPTS)
    assert out_c3.shape == (B, 1) and out_c7.shape == (B, 1)
    assert jnp.allclose(out_full, ref_full, atol=1e-2)
    assert jnp.allclose(out_c3, ref_c3, atol=1e-2)
    assert jnp.allclose(out_c7, ref_c7, atol=1e-2)

    print("KERNEL_OK")
</pallas_src>

<mosaic_0001>
module attributes {stable_mosaic.version = 11 : i64} {
  func.func @_sigmoid_linear_kernel(%arg0: i32, %arg1: memref<8x1024xf32, #tpu.memory_space<vmem>>, %arg2: memref<384x1024xbf16, #tpu.memory_space<vmem>>, %arg3: memref<1x384xf32, #tpu.memory_space<vmem>>, %arg4: memref<8x384xf32, #tpu.memory_space<vmem>>) attributes {dimension_semantics = [#tpu.dimension_semantics<parallel>], iteration_bounds = array<i64: 2>, scalar_prefetch = 0 : i64, scratch_operands = 0 : i64, tpu.core_type = #tpu.core_type<tc>, window_params = [{pipeline_mode = #tpu.pipeline_mode<synchronous>, transform_indices = @transform_0, window_bounds = array<i64: 8, 1024>}, {transform_indices = @transform_1, window_bounds = array<i64: 384, 1024>}, {transform_indices = @transform_2, window_bounds = array<i64: 1, 384>}, {transform_indices = @transform_3, window_bounds = array<i64: 8, 384>}]} {
    %c0 = arith.constant 0 : index
    %c0_0 = arith.constant 0 : index
    %0 = vector.load %arg1[%c0, %c0_0] : memref<8x1024xf32, #tpu.memory_space<vmem>>, vector<8x1024xf32>
    %1 = arith.truncf %0 : vector<8x1024xf32> to vector<8x1024xbf16>
    %c0_1 = arith.constant 0 : index
    %c0_2 = arith.constant 0 : index
    %2 = vector.load %arg2[%c0_1, %c0_2] : memref<384x1024xbf16, #tpu.memory_space<vmem>>, vector<384x1024xbf16>
    %cst = arith.constant dense<0.000000e+00> : vector<8x384xf32>
    %3 = tpu.matmul %1, %2, %cst {dimension_numbers = #tpu.dot_dimension_numbers<[1], [1], [0], [0], [0, 0, 1, 0], [], []>} : vector<8x1024xbf16>, vector<384x1024xbf16>, vector<8x384xf32> -> vector<8x384xf32>
    %c0_3 = arith.constant 0 : index
    %c0_4 = arith.constant 0 : index
    %4 = vector.load %arg3[%c0_3, %c0_4] : memref<1x384xf32, #tpu.memory_space<vmem>>, vector<1x384xf32>
    %5 = vector.broadcast %4 : vector<1x384xf32> to vector<8x384xf32>
    %6 = arith.addf %3, %5 : vector<8x384xf32>
    %cst_5 = arith.constant 0.000000e+00 : f32
    %7 = vector.broadcast %cst_5 : f32 to vector<8x384xf32>
    %8 = arith.subf %7, %6 : vector<8x384xf32>
    %9 = math.exp %8 : vector<8x384xf32>
    %cst_6 = arith.constant 1.000000e+00 : f32
    %10 = vector.broadcast %cst_6 : f32 to vector<8x384xf32>
    %11 = arith.addf %10, %9 : vector<8x384xf32>
    %cst_7 = arith.constant 1.000000e+00 : f32
    %12 = vector.broadcast %cst_7 : f32 to vector<8x384xf32>
    %13 = arith.divf %12, %11 : vector<8x384xf32>
    %c0_8 = arith.constant 0 : index
    %c0_9 = arith.constant 0 : index
    %14 = vector.load %arg4[%c0_8, %c0_9] : memref<8x384xf32, #tpu.memory_space<vmem>>, vector<8x384xf32>
    tpu.vector_store %arg4[%c0_8, %c0_9], %13 {strides = array<i32>} : memref<8x384xf32, #tpu.memory_space<vmem>>, vector<8x384xf32>,
    return
  }
  func.func @transform_0(%arg0: i32) -> (i32, i32) {
    %c0_i32 = arith.constant 0 : i32
    %c0_i32_0 = arith.constant 0 : i32
    %c0_i32_1 = arith.constant 0 : i32
    return %c0_i32, %c0_i32_0 : i32, i32
  }
  func.func @transform_1(%arg0: i32) -> (i32, i32) {
    %c0_i32 = arith.constant 0 : i32
    %c0_i32_0 = arith.constant 0 : i32
    return %arg0, %c0_i32 : i32, i32
  }
  func.func @transform_2(%arg0: i32) -> (i32, i32) {
    %c0_i32 = arith.constant 0 : i32
    %c0_i32_0 = arith.constant 0 : i32
    return %c0_i32, %arg0 : i32, i32
  }
  func.func @transform_3(%arg0: i32) -> (i32, i32) {
    %c0_i32 = arith.constant 0 : i32
    %c0_i32_0 = arith.constant 0 : i32
    return %c0_i32, %arg0 : i32, i32
  }
}

</mosaic_0001>

<bundles_post_ra>
// kernel: single_sigmoid_forward.1
= control target key start
LH: loop header
LB: loop body
LE: loop exit
PB: predicated region body
PF: predicated region fallthrough
CT: control target
= control target key end

     0   :  { %8 = vsyncpa [#allocation3], 0  ;;  %s2853_s0 = inlined_call_operand.hbm [shape: f32[8,1024], index: 0, kind: input, shape index: {}]   ;;  %s2854_s1 = inlined_call_operand.hbm [shape: bf16[768,1024], index: 1, kind: input, shape index: {}]   ;;  %s2855_s2 = inlined_call_operand.hbm [shape: f32[1,768], index: 2, kind: input, shape index: {}]   ;;  %s2856_s3 = inlined_call_operand.hbm [shape: f32[8,660], index: 3, kind: output, shape index: {}]  }
   0x1   :  { %9 = vsyncpa [#allocation6], 0 }
   0x2   :  { %11 = vsyncpa [#allocation6 + $0x1], 0 }
   0x3   :  { %12 = vsyncpa [#allocation4], 0 }
   0x4   :  { %14 = vsyncpa [#allocation4 + $0x1], 0  ;;  %s2390_s12 = smov 0   ;;  %s2392_s13 = smov 0  }
   0x5   :  { %s2394_s14 = smov 0   ;;  %s2396_s15 = smov 0  }
   0x6 LB: > { %s2411_s16 = sadd.s32 1, %s2362_s15   ;;  %s48_s17 = sadd.s32 1, %s2358_s14  ;;  %s2362_s15 = sphi %s2396_s15, %s2883_s15   ;;  %s2358_s14 = sphi %s2394_s14, %s2882_s14   ;;  %s2354_s13 = sphi %s2392_s13, %s2881_s13   ;;  %s2350_s12 = sphi %s2390_s12, %s2880_s12  }
   0x7   : > { %s45_s18 = ssub.s32 %s2362_s15, %s2411_s16  ;;  %p55_p0 = scmp.ne.s32.totalorder %s2358_s14, %s2354_s13 }
   0x8   : > { %p46_p1 = scmp.eq.s32.totalorder %s45_s18, 0  ;;  %p56_p2 = scmp.eq.s32.totalorder %s2362_s15, 0 }
   0x9   : > { %p2154_p4 = scmp.lt.s32.totalorder %s2362_s15, 2  ;;  %s148_s20 = sand.u32 1, %s2362_s15  }
   0xa   : > { %s2422_s19 = scalar_select %p46_p1, %s2358_s14, %s48_s17  }
   0xb   : > { %p57_p5 = por %p56_p2, %p55_p0  ;;  %s150_s21 = sand.u32 1, %s2358_s14  }
   0xc   : > { %s2123_s22 = smul.u32 1536, %s150_s21  ;;  %s2443_s30 = scalar_lea.sflag [#allocation6], %s148_s20 }
   0xd   : > { %p2431_p6 = pnand %p2154_p4, %p57_p5  ;;  %s2097_s24 = smul.u32 24576, %s2362_s15 }
   0xe   : > { %s152_s28 = scalar_lea.vmem [#allocation5], %s2123_s22  ;;  %s2209_s7 = scalar_lea.hbm %s2854_s1, 49152 }
   0xf   : > { %s2864_s23 = scalar_select %p2431_p6, 1, 0 }
  0x10   : > { %s2439_s27 = scalar_lea.hbm %s2854_s1, %s2097_s24  ;;  %s160_s29 = sshll.u32 %s152_s28, 4  ;;  %s2441_s29 = int_to_ptr.vmem [resolvable:$true] %s160_s29 }
  0x11   : > { %s2204_s4 = scalar_lea.hbm %s2439_s27, 24576  ;;  %p2858_p8 = pneg %p2431_p6 }
  0x12   : > { %p2205_p7 = scmp.ne.s32.totalorder %s2439_s27, %s2204_s4  ;;  %p2210_p11 = scmp.lt.u32.totalorder %s2439_s27, %s2854_s1 }
  0x13   : > { %p2211_p12 = scmp.lt.u32.totalorder %s2209_s7, %s2204_s4  ;;  %p2213_p1 = scmp.lt.u32.totalorder %s2204_s4, %s2439_s27 }
  0x14   : > { %p2207_p9 = pnand %p2858_p8, %p2205_p7 }
  0x15   : > { %p2212_p13 = por %p2211_p12, %p2210_p11 }
  0x16   : > { %p2208_p10 = pneg %p2207_p9 }
  0x17   : > { %p2214_p2 = por %p2213_p1, %p2212_p13 }
  0x19   : > { %p2215_p4 = pnand %p2214_p2, %p2208_p10 }
  0x1b   : > { %2218 = shalt.err (!%p2215_p4)
}
  0x1c   : > { %s2219_s10 = scalar_lea.vmem %s2441_s29, 24576  ;;  %s2364_s11 = smov [#allocation5]  }
  0x1d   : > { %p2220_p5 = scmp.ne.s32.totalorder %s2441_s29, %s2219_s10  ;;  %s2224_s17 = sshll.u32 %s2364_s11, 4  ;;  %s2225_s17 = int_to_ptr.vmem [resolvable:$false] %s2224_s17 }
  0x1e   : > { %s2226_s18 = scalar_lea.vmem %s2225_s17, 49152  ;;  %p2227_p3 = scmp.lt.s32.totalorder %s2441_s29, %s2225_s17 }
  0x1f   : > { %p2222_p7 = pnand %p2220_p5, %p2858_p8  ;;  %p2228_p11 = scmp.lt.s32.totalorder %s2226_s18, %s2219_s10 }
  0x21   : > { %p2223_p9 = pneg %p2222_p7  ;;  %p2229_p12 = por %p2228_p11, %p2227_p3 }
  0x23   : > { %p2230_p13 = pnand %p2229_p12, %p2223_p9 }
  0x25   : > { %2233 = shalt.err (!%p2230_p13)
}
  0x26   : > { %s2365_s20 = smov 512   ;;  %s2366_s22 = smov 32  }
  0x27   : > { %2145 = dma.hbm_to_vmem [thread:$0]  (!%p2431_p6), %s2439_s27, 24576, %s2441_s29, %s2443_s30, %s2365_s20, %s2365_s20, %s2366_s22  }
  0x28   : > { %s2472_s24 = sadd.s32 4294967295, %s2362_s15   ;;  %s1889_s25 = sadd.s32 4294967294, %s2362_s15  }
  0x29   : > { %p61_p3 = scmp.ne.s32.totalorder %s2354_s13, %s2350_s12  ;;  %p2857_p10 = scmp.eq.s32.totalorder %s2472_s24, 0 }
  0x2a   : > { %p111_p1 = scmp.eq.s32.totalorder %s2472_s24, 1  ;;  %p117_p2 = scmp.eq.s32.totalorder %s1889_s25, 1 }
  0x2b   : > { %p2481_p4 = por %p2857_p10, %p61_p3  ;;  %p1890_p5 = scmp.ge.s32.totalorder %s2362_s15, 1 }
  0x2c   : > { %p2489_p7 = por %p111_p1, %p55_p0  ;;  %p2493_p9 = por %p117_p2, %p61_p3 }
  0x2d   : > { %s2865_s26 = scalar_select %p2481_p4, 1, 0 }
  0x2e   : > { %s2866_s27 = scalar_select %p2489_p7, 1, 0 }
  0x2f   : > { %s2867_s28 = scalar_select %p2493_p9, 1, 0 }
  0x30   : > { %p124_p11 = scmp.lt.s32.totalorder %s2362_s15, 3  ;;  %s2124_s29 = smul.u32 3, %s150_s21 }
  0x31   : > { %s2367_s5 = smov [#allocation2]   ;;  %s2095_s7 = smul.u32 48, %s2362_s15 }
  0x32   : > { %p2500_p12 = pnand %p1890_p5, %p124_p11  ;;  %s137_s6 = sshll.u32 %s2367_s5, 4  ;;  %s138_s6 = int_to_ptr.vmem [resolvable:$true] %s137_s6 }
  0x33   : > { %s174_s8 = scalar_lea.vmem [#allocation7], %s2124_s29  ;;  %s2516_s17 = scalar_lea.hbm %s2855_s2, %s2095_s7 }
  0x34   : > { %s2868_s4 = scalar_select %p2500_p12, 1, 0 }
  0x35   : > { %p2138_p13 = pneg %p2500_p12  ;;  %s182_s9 = sshll.u32 %s174_s8, 4  ;;  %s2518_s9 = int_to_ptr.vmem [resolvable:$true] %s182_s9 }
  0x36   : > { %s2234_s22 = scalar_lea.hbm %s2853_s0, 1024 }
  0x37   : > { %p2509_p0 = pnand %p2138_p13, %p2857_p10  ;;  %p2235_p3 = scmp.ne.s32.totalorder %s2853_s0, %s2234_s22 }
  0x38   : > { %p2241_p11 = scmp.lt.u32.totalorder %s2234_s22, %s2853_s0 }
  0x39   : > { %p2236_p1 = pneg %p2509_p0 }
  0x3b   : > { %p2237_p2 = pnand %p2236_p1, %p2235_p3 }
  0x3d   : > { %p2238_p5 = pneg %p2237_p2 }
  0x3f   : > { %p2243_p13 = pnand %p2241_p11, %p2238_p5 }
  0x41   : > { %2246 = shalt.err (!%p2243_p13)
}
  0x42   : > { %s2247_s7 = scalar_lea.vmem %s138_s6, 1024  ;;  %p2255_p7 = scmp.lt.s32.totalorder %s138_s6, %s138_s6 }
  0x43   : > { %p2248_p10 = scmp.ne.s32.totalorder %s138_s6, %s2247_s7  ;;  %p2256_p4 = scmp.lt.s32.totalorder %s2247_s7, %s2247_s7 }
  0x45   : > { %p2250_p8 = pnand %p2248_p10, %p2236_p1  ;;  %p2257_p12 = por %p2256_p4, %p2255_p7 }
  0x47   : > { %p2251_p9 = pneg %p2250_p8 }
  0x49   : > { %p2258_p6 = pnand %p2257_p12, %p2251_p9 }
  0x4b   : > { %2261 = shalt.err (!%p2258_p6)
}
  0x4c   : > { %2141 = dma.hbm_to_vmem [thread:$0]  (!%p2509_p0), %s2853_s0, 1024, %s138_s6, [#allocation3]  }
  0x4d   : > { %s2262_s18 = scalar_lea.hbm %s2516_s17, 48  ;;  %p2870_p10 = scmp.ne.s32.totalorder %s2864_s23, 0 }
  0x4e   : > { %p2263_p3 = scmp.ne.s32.totalorder %s2516_s17, %s2262_s18  ;;  %s2267_s25 = scalar_lea.hbm %s2855_s2, 96 }
  0x4f   : > { %p2871_p8 = pneg %p2870_p10  ;;  %p2268_p6 = scmp.lt.u32.totalorder %s2516_s17, %s2855_s2 }
  0x50   : > { %p2269_p4 = scmp.lt.u32.totalorder %s2267_s25, %s2262_s18  ;;  %p2271_p9 = scmp.lt.u32.totalorder %s2262_s18, %s2516_s17 }
  0x51   : > { %p2265_p1 = pnand %p2263_p3, %p2871_p8 }
  0x52   : > { %p2270_p7 = por %p2269_p4, %p2268_p6 }
  0x53   : > { %p2266_p2 = pneg %p2265_p1 }
  0x54   : > { %p2272_p12 = por %p2271_p9, %p2270_p7 }
  0x56   : > { %p2273_p5 = pnand %p2272_p12, %p2266_p2 }
  0x58   : > { %2276 = shalt.err (!%p2273_p5)
}
  0x59   : > { %s2277_s6 = scalar_lea.vmem %s2518_s9, 48  ;;  %p2872_p11 = pmov %p2871_p8 }
  0x5a   : > { %p2278_p0 = scmp.ne.s32.totalorder %s2518_s9, %s2277_s6  ;;  %s2368_s5 = smov [#allocation7]  }
  0x5b   : > { %s2282_s8 = sshll.u32 %s2368_s5, 4  ;;  %s2283_s8 = int_to_ptr.vmem [resolvable:$false] %s2282_s8 }
  0x5c   : > { %p2280_p13 = pnand %p2278_p0, %p2872_p11  ;;  %s2284_s7 = scalar_lea.vmem %s2283_s8, 96 }
  0x5d   : > { %p2285_p8 = scmp.lt.s32.totalorder %s2518_s9, %s2283_s8  ;;  %p2286_p1 = scmp.lt.s32.totalorder %s2284_s7, %s2277_s6 }
  0x5e   : > { %p2281_p3 = pneg %p2280_p13 }
  0x5f   : > { %p2287_p6 = por %p2286_p1, %p2285_p8 }
  0x61   : > { %p2288_p4 = pnand %p2287_p6, %p2281_p3 }
  0x63   : > { %2291 = shalt.err (!%p2288_p4)
}
  0x64   : > { %2148 = dma.hbm_to_vmem [thread:$0]  (!%p2870_p10), %s2516_s17, 48, %s2518_s9, %s2443_s30  }
  0x65   : > { %p2873_p2 = scmp.ne.s32.totalorder %s2868_s4, 0 }
  0x66   : > { %p2874_p7 = scmp.eq.s32.totalorder (!%p2873_p2), %s2472_s24, 0 }
  0x67   : > { %191 = sbr.rel (%p2873_p2) target bundleno = 762 (0x2fa), region = 32 }
  0x6e   : > { %2337 = dma.done.wait (%p2874_p7), [#allocation3], 1024   ;;  %p2875_p9 = pmov %p2874_p7 }
  0x6f   : > { %s197_s11 = sand.u32 1, %s2472_s24   ;;  %s2568_s21 = sand.u32 1, %s2354_s13  }
  0x70   : > { %2339 = vsyncadd (%p2875_p9), [#allocation3], 4294966272  ;;  %s2125_s23 = smul.u32 1536, %s2568_s21  ;;  %s198_s18 = scalar_lea.sflag [#allocation6], %s197_s11 }
  0x71   : > { %p2876_p10 = scmp.ne.s32.totalorder %s2865_s26, 0 }
  0x72   : > { %s2571_s20 = scalar_lea.vmem [#allocation5], %s2125_s23 }
  0x73   : > { %2341 = dma.done.wait (%p2876_p10), %s198_s18, 24624  }
  0x74   : > { %2343 = vsyncadd (%p2876_p10), %s198_s18, 4294942672  ;;  %v258_v0 = vld [vmem:[%s2571_s20] sm:$0xff]  ;;  %v259_v2 = vld [vmem:[%s2571_s20 + $0x8] sm:$0xff]  ;;  %s2126_s30 = smul.u32 3, %s2568_s21  ;;  %s1773_s6 = scalar_lea.sflag [#allocation4], %s2568_s21 }
  0x75   : > { %v262_v1 = vld [vmem:[%s2571_s20 + $0x20] sm:$0xff]  ;;  %v263_v4 = vld [vmem:[%s2571_s20 + $0x28] sm:$0xff]  ;;  %v245_v34 = vld [vmem:[#allocation2 + $0x18] sm:$0xff]  ;;  %s2127_s4 = smul.u32 24, %s2568_s21  ;;  %p2877_p5 = scmp.ne.s32.totalorder %s2866_s27, 0 }
  0x76   : > { %v1899_v3 = vcombine.high %v258_v0, %v262_v1  ;;  %v1898_v5 = vcombine.low %v258_v0, %v262_v1  ;;  %v266_v6 = vld [vmem:[%s2571_s20 + $0x40] sm:$0xff]  ;;  %v1901_v8 = vcombine.high %v259_v2, %v263_v4  ;;  %v1900_v9 = vcombine.low %v259_v2, %v263_v4  ;;  %v267_v11 = vld [vmem:[%s2571_s20 + $0x48] sm:$0xff]  ;;  %s210_s26 = scalar_lea.vmem [#allocation7], %s2126_s30  ;;  %s2096_s9 = smul.u32 384, %s2472_s24 }
  0x77   : > { %v270_v7 = vld [vmem:[%s2571_s20 + $0x60] sm:$0xff]  ;;  %v271_v12 = vld [vmem:[%s2571_s20 + $0x68] sm:$0xff]  ;;  %v2599_v37 = vpack.c.bf16 %v245_v34, %v245_v34  ;;  %s237_s17 = scalar_lea.vmem [#allocation8], %s2127_s4  ;;  %s2369_s5 = smov [#allocation8]  }
  0x78   : > { %v1907_v10 = vcombine.high %v266_v6, %v270_v7  ;;  %1427 = vmatprep.subr.bf16.mxu1 %v1899_v3  ;;  %v1909_v13 = vcombine.high %v267_v11, %v271_v12  ;;  %1468 = vmatprep.subr.bf16.mxu0 %v1901_v8  ;;  %v274_v14 = vld [vmem:[%s2571_s20 + $0x80] sm:$0xff]  ;;  %v275_v16 = vld [vmem:[%s2571_s20 + $0x88] sm:$0xff]  ;;  %v1906_v18 = vcombine.low %v266_v6, %v270_v7  ;;  %s1787_s22 = sshll.u32 %s237_s17, 4  ;;  %s2809_s29 = scalar_lea.hbm %s2856_s3, %s2096_s9  ;;  %s2811_s22 = int_to_ptr.vmem [resolvable:$true] %s1787_s22 }
  0x79   : > { %1428 = vmatpush1.bf16.xpose.msra.mxu1 %v1898_v5  ;;  %1469 = vmatpush1.bf16.xpose.msra.mxu0 %v1900_v9  ;;  %v278_v15 = vld [vmem:[%s2571_s20 + $0xa0] sm:$0xff]  ;;  %v279_v17 = vld [vmem:[%s2571_s20 + $0xa8] sm:$0xff]  ;;  %v1908_v19 = vcombine.low %v267_v11, %v271_v12  ;;  %s2292_s24 = scalar_lea.vmem %s2811_s22, 384  ;;  %s2296_s8 = sshll.u32 %s2369_s5, 4  ;;  %s2297_s8 = int_to_ptr.vmem [resolvable:$false] %s2296_s8 }
  0x7a   : > { %1429 = vmatprep.subr.bf16.mxu1 %v1907_v10  ;;  %1470 = vmatprep.subr.bf16.mxu0 %v1909_v13  ;;  %v1915_v20 = vcombine.high %v274_v14, %v278_v15  ;;  %v1917_v21 = vcombine.high %v275_v16, %v279_v17  ;;  %v282_v22 = vld [vmem:[%s2571_s20 + $0xc0] sm:$0xff]  ;;  %v283_v24 = vld [vmem:[%s2571_s20 + $0xc8] sm:$0xff]  ;;  %v1914_v26 = vcombine.low %v274_v14, %v278_v15  ;;  %p2293_p12 = scmp.ne.s32.totalorder %s2811_s22, %s2292_s24  ;;  %s2298_s7 = scalar_lea.vmem %s2297_s8, 768 }
  0x7b   : > { %v286_v23 = vld [vmem:[%s2571_s20 + $0xe0] sm:$0xff]  ;;  %v287_v25 = vld [vmem:[%s2571_s20 + $0xe8] sm:$0xff]  ;;  %v1916_v27 = vcombine.low %v275_v16, %v279_v17  ;;  %1500 = vmatprep.mubr.bf16.mxu0 %v2599_v37  ;;  %p2299_p13 = scmp.lt.s32.totalorder %s2811_s22, %s2297_s8  ;;  %p2300_p3 = scmp.lt.s32.totalorder %s2298_s7, %s2292_s24 }
  0x7c   : > { %v1923_v28 = vcombine.high %v282_v22, %v286_v23  ;;  %v1925_v29 = vcombine.high %v283_v24, %v287_v25  ;;  %v243_v30 = vld [vmem:[#allocation2 + $0x8] sm:$0xff]  ;;  %v290_v31 = vld [vmem:[%s2571_s20 + $0x100] sm:$0xff]  ;;  %v1922_v38 = vcombine.low %v282_v22, %v286_v23  ;;  %v1924_v39 = vcombine.low %v283_v24, %v287_v25  ;;  %p2294_p0 = pnand %p2293_p12, %p2877_p5 }
  0x7d   : > { %v294_v32 = vld [vmem:[%s2571_s20 + $0x120] sm:$0xff]  ;;  %v2595_v33 = vpack.c.bf16 %v243_v30, %v243_v30  ;;  %v291_v35 = vld [vmem:[%s2571_s20 + $0x108] sm:$0xff]  ;;  %p2301_p8 = por %p2300_p3, %p2299_p13 }
  0x7e   : > { %v295_v36 = vld [vmem:[%s2571_s20 + $0x128] sm:$0xff]  ;;  %v1931_v40 = vcombine.high %v290_v31, %v294_v32  ;;  %v298_v42 = vld [vmem:[%s2571_s20 + $0x140] sm:$0xff]  ;;  %v1930_v46 = vcombine.low %v290_v31, %v294_v32  ;;  %p2295_p11 = pneg %p2294_p0 }
  0x7f   : > { %1459 = vmatprep.mubr.bf16.mxu1 %v2595_v33  ;;  %v1933_v41 = vcombine.high %v291_v35, %v295_v36  ;;  %v302_v43 = vld [vmem:[%s2571_s20 + $0x160] sm:$0xff]  ;;  %v299_v44 = vld [vmem:[%s2571_s20 + $0x148] sm:$0xff]  ;;  %v1932_v47 = vcombine.low %v291_v35, %v295_v36 }
  0x80   : > { %v303_v45 = vld [vmem:[%s2571_s20 + $0x168] sm:$0xff]  ;;  %v1939_v48 = vcombine.high %v298_v42, %v302_v43  ;;  %v306_v50 = vld [vmem:[%s2571_s20 + $0x180] sm:$0xff]  ;;  %v1938_v54 = vcombine.low %v298_v42, %v302_v43  ;;  %p2302_p1 = pnand %p2301_p8, %p2295_p11 }
  0x81   : > { %1430 = vmatpush1.bf16.xpose.msra.mxu1 %v1906_v18  ;;  %1471 = vmatpush1.bf16.xpose.msra.mxu0 %v1908_v19  ;;  %v1941_v49 = vcombine.high %v299_v44, %v303_v45  ;;  %v310_v51 = vld [vmem:[%s2571_s20 + $0x1a0] sm:$0xff]  ;;  %v307_v52 = vld [vmem:[%s2571_s20 + $0x188] sm:$0xff]  ;;  %v1940_v55 = vcombine.low %v299_v44, %v303_v45 }
  0x82   : > { %1431 = vmatprep.subr.bf16.mxu1 %v1915_v20  ;;  %1472 = vmatprep.subr.bf16.mxu0 %v1917_v21  ;;  %v311_v53 = vld [vmem:[%s2571_s20 + $0x1a8] sm:$0xff]  ;;  %v1947_v56 = vcombine.high %v306_v50, %v310_v51  ;;  %v314_v58 = vld [vmem:[%s2571_s20 + $0x1c0] sm:$0xff]  ;;  %v1946_v62 = vcombine.low %v306_v50, %v310_v51 }
  0x83   : > { %v1949_v57 = vcombine.high %v307_v52, %v311_v53  ;;  %v318_v59 = vld [vmem:[%s2571_s20 + $0x1e0] sm:$0xff]  ;;  %v315_v60 = vld [vmem:[%s2571_s20 + $0x1c8] sm:$0xff]  ;;  %v1948_v63 = vcombine.low %v307_v52, %v311_v53 }
  0x84   : > { %v319_v61 = vld [vmem:[%s2571_s20 + $0x1e8] sm:$0xff]  ;;  %v1955_v0 = vcombine.high %v314_v58, %v318_v59  ;;  %v322_v2 = vld [vmem:[%s2571_s20 + $0x200] sm:$0xff]  ;;  %v1954_v6 = vcombine.low %v314_v58, %v318_v59 }
  0x85   : > { %v1957_v1 = vcombine.high %v315_v60, %v319_v61  ;;  %v326_v3 = vld [vmem:[%s2571_s20 + $0x220] sm:$0xff]  ;;  %v323_v4 = vld [vmem:[%s2571_s20 + $0x208] sm:$0xff]  ;;  %v1956_v7 = vcombine.low %v315_v60, %v319_v61 }
  0x86   : > { %v327_v5 = vld [vmem:[%s2571_s20 + $0x228] sm:$0xff]  ;;  %v1963_v8 = vcombine.high %v322_v2, %v326_v3  ;;  %v330_v10 = vld [vmem:[%s2571_s20 + $0x240] sm:$0xff]  ;;  %v1962_v14 = vcombine.low %v322_v2, %v326_v3 }
  0x87   : > { %v1965_v9 = vcombine.high %v323_v4, %v327_v5  ;;  %v334_v11 = vld [vmem:[%s2571_s20 + $0x260] sm:$0xff]  ;;  %v331_v12 = vld [vmem:[%s2571_s20 + $0x248] sm:$0xff]  ;;  %v1964_v15 = vcombine.low %v323_v4, %v327_v5 }
  0x88   : > { %v335_v13 = vld [vmem:[%s2571_s20 + $0x268] sm:$0xff]  ;;  %v1971_v16 = vcombine.high %v330_v10, %v334_v11  ;;  %v338_v18 = vld [vmem:[%s2571_s20 + $0x280] sm:$0xff]  ;;  %v1970_v22 = vcombine.low %v330_v10, %v334_v11 }
  0x89   : > { %1432 = vmatpush1.bf16.xpose.msra.mxu1 %v1914_v26  ;;  %1473 = vmatpush1.bf16.xpose.msra.mxu0 %v1916_v27  ;;  %v1973_v17 = vcombine.high %v331_v12, %v335_v13  ;;  %v342_v19 = vld [vmem:[%s2571_s20 + $0x2a0] sm:$0xff]  ;;  %v339_v20 = vld [vmem:[%s2571_s20 + $0x288] sm:$0xff]  ;;  %v1972_v23 = vcombine.low %v331_v12, %v335_v13  ;;  %v244_v13 = vld [vmem:[#allocation2 + $0x10] sm:$0xff] }
  0x8a   : > { %1433 = vmatprep.subr.bf16.mxu1 %v1923_v28  ;;  %1474 = vmatprep.subr.bf16.mxu0 %v1925_v29  ;;  %v343_v21 = vld [vmem:[%s2571_s20 + $0x2a8] sm:$0xff]  ;;  %v1979_v24 = vcombine.high %v338_v18, %v342_v19  ;;  %v346_v26 = vld [vmem:[%s2571_s20 + $0x2c0] sm:$0xff]  ;;  %v1978_v30 = vcombine.low %v338_v18, %v342_v19  ;;  %v272_v18 = vld [vmem:[%s2571_s20 + $0x70] sm:$0xff] }
  0x8b   : > { %v1981_v25 = vcombine.high %v339_v20, %v343_v21  ;;  %v350_v27 = vld [vmem:[%s2571_s20 + $0x2e0] sm:$0xff]  ;;  %v347_v28 = vld [vmem:[%s2571_s20 + $0x2c8] sm:$0xff]  ;;  %v1980_v31 = vcombine.low %v339_v20, %v343_v21  ;;  %v2657_v20 = vpack.c.bf16 %v244_v13, %v244_v13  ;;  %v324_v13 = vld [vmem:[%s2571_s20 + $0x210] sm:$0xff] }
  0x8c   : > { %v351_v29 = vld [vmem:[%s2571_s20 + $0x2e8] sm:$0xff]  ;;  %v1987_v32 = vcombine.high %v346_v26, %v350_v27  ;;  %v354_v35 = vld [vmem:[%s2571_s20 + $0x300] sm:$0xff] }
  0x8d   : > { %v1989_v34 = vcombine.high %v347_v28, %v351_v29  ;;  %v358_v36 = vld [vmem:[%s2571_s20 + $0x320] sm:$0xff]  ;;  %v247_v21 = vld [vmem:[#allocation2 + $0x28] sm:$0xff] }
  0x8e   : > { %v1995_v42 = vcombine.high %v354_v35, %v358_v36  ;;  %v362_v44 = vld [vmem:[%s2571_s20 + $0x340] sm:$0xff] }
  0x8f   : > { %v366_v45 = vld [vmem:[%s2571_s20 + $0x360] sm:$0xff] }
  0x90   : > { %v2003_v50 = vcombine.high %v362_v44, %v366_v45  ;;  %v370_v52 = vld [vmem:[%s2571_s20 + $0x380] sm:$0xff] }
  0x91   : > { %1434 = vmatpush1.bf16.xpose.msra.mxu1 %v1922_v38  ;;  %1475 = vmatpush1.bf16.xpose.msra.mxu0 %v1924_v39  ;;  %v355_v38 = vld [vmem:[%s2571_s20 + $0x308] sm:$0xff]  ;;  %v374_v53 = vld [vmem:[%s2571_s20 + $0x3a0] sm:$0xff] }
  0x92   : > { %1435 = vmatprep.subr.bf16.mxu1 %v1931_v40  ;;  %1476 = vmatprep.subr.bf16.mxu0 %v1933_v41  ;;  %v359_v39 = vld [vmem:[%s2571_s20 + $0x328] sm:$0xff]  ;;  %v1986_v40 = vcombine.low %v346_v26, %v350_v27  ;;  %v1988_v41 = vcombine.low %v347_v28, %v351_v29  ;;  %v2011_v58 = vcombine.high %v370_v52, %v374_v53  ;;  %v378_v60 = vld [vmem:[%s2571_s20 + $0x3c0] sm:$0xff]  ;;  %v276_v28 = vld [vmem:[%s2571_s20 + $0x90] sm:$0xff] }
  0x93   : > { %v1997_v43 = vcombine.high %v355_v38, %v359_v39  ;;  %v382_v61 = vld [vmem:[%s2571_s20 + $0x3e0] sm:$0xff]  ;;  %v280_v29 = vld [vmem:[%s2571_s20 + $0xb0] sm:$0xff] }
  0x94   : > { %v2019_v2 = vcombine.high %v378_v60, %v382_v61  ;;  %v386_v4 = vld [vmem:[%s2571_s20 + $0x400] sm:$0xff] }
  0x95   : > { %v390_v5 = vld [vmem:[%s2571_s20 + $0x420] sm:$0xff] }
  0x96   : > { %v2027_v10 = vcombine.high %v386_v4, %v390_v5  ;;  %v242_v12 = vld [vmem:[#allocation2] sm:$0xff]  ;;  %v2026_v19 = vcombine.low %v386_v4, %v390_v5  ;;  %v316_v5 = vld [vmem:[%s2571_s20 + $0x1d0] sm:$0xff] }
  0x97   : > { %v402_v26 = vld [vmem:[%s2571_s20 + $0x480] sm:$0xff] }
  0x98   : > { %v406_v27 = vld [vmem:[%s2571_s20 + $0x4a0] sm:$0xff] }
  0x99   : > { %1436 = vmatpush1.bf16.xpose.msra.mxu1 %v1930_v46  ;;  %1477 = vmatpush1.bf16.xpose.msra.mxu0 %v1932_v47  ;;  %v363_v46 = vld [vmem:[%s2571_s20 + $0x348] sm:$0xff]  ;;  %v446_v4 = vld [vmem:[%s2571_s20 + $0x5e0] sm:$0xff] }
  0x9a   : > { %1437 = vmatprep.subr.bf16.mxu1 %v1939_v48  ;;  %1478 = vmatprep.subr.bf16.mxu0 %v1941_v49  ;;  %v367_v47 = vld [vmem:[%s2571_s20 + $0x368] sm:$0xff]  ;;  %v1994_v48 = vcombine.low %v354_v35, %v358_v36  ;;  %v1996_v49 = vcombine.low %v355_v38, %v359_v39  ;;  %v410_v35 = vld [vmem:[%s2571_s20 + $0x4c0] sm:$0xff]  ;;  %v284_v38 = vld [vmem:[%s2571_s20 + $0xd0] sm:$0xff]  ;;  %v2042_v39 = vcombine.low %v402_v26, %v406_v27 }
  0x9b   : > { %v2005_v51 = vcombine.high %v363_v46, %v367_v47  ;;  %v414_v36 = vld [vmem:[%s2571_s20 + $0x4e0] sm:$0xff] }
  0xa1   : > { %1438 = vmatpush1.bf16.xpose.msra.mxu1 %v1938_v54  ;;  %1479 = vmatpush1.bf16.xpose.msra.mxu0 %v1940_v55  ;;  %v371_v54 = vld [vmem:[%s2571_s20 + $0x388] sm:$0xff] }
  0xa2   : > { %1439 = vmatprep.subr.bf16.mxu1 %v1947_v56  ;;  %1480 = vmatprep.subr.bf16.mxu0 %v1949_v57  ;;  %v375_v55 = vld [vmem:[%s2571_s20 + $0x3a8] sm:$0xff]  ;;  %v2002_v56 = vcombine.low %v362_v44, %v366_v45  ;;  %v2004_v57 = vcombine.low %v363_v46, %v367_v47  ;;  %v422_v44 = vld [vmem:[%s2571_s20 + $0x520] sm:$0xff]  ;;  %v292_v45 = vld [vmem:[%s2571_s20 + $0x110] sm:$0xff]  ;;  %v2050_v47 = vcombine.low %v410_v35, %v414_v36 }
  0xa3   : > { %v2013_v59 = vcombine.high %v371_v54, %v375_v55  ;;  %v296_v46 = vld [vmem:[%s2571_s20 + $0x130] sm:$0xff] }
  0xa9   : > { %1440 = vmatpush1.bf16.xpose.msra.mxu1 %v1946_v62  ;;  %1481 = vmatpush1.bf16.xpose.msra.mxu0 %v1948_v63  ;;  %v379_v62 = vld [vmem:[%s2571_s20 + $0x3c8] sm:$0xff] }
  0xaa   : > { %1441 = vmatprep.subr.bf16.mxu1 %v1955_v0  ;;  %1482 = vmatprep.subr.bf16.mxu0 %v1957_v1  ;;  %v383_v63 = vld [vmem:[%s2571_s20 + $0x3e8] sm:$0xff]  ;;  %v2010_v0 = vcombine.low %v370_v52, %v374_v53  ;;  %v2012_v1 = vcombine.low %v371_v54, %v375_v55  ;;  %v430_v52 = vld [vmem:[%s2571_s20 + $0x560] sm:$0xff]  ;;  %v300_v53 = vld [vmem:[%s2571_s20 + $0x150] sm:$0xff] }
  0xab   : > { %v2021_v3 = vcombine.high %v379_v62, %v383_v63  ;;  %v304_v54 = vld [vmem:[%s2571_s20 + $0x170] sm:$0xff] }
  0xb1   : > { %1442 = vmatpush1.bf16.xpose.msra.mxu1 %v1954_v6  ;;  %1483 = vmatpush1.bf16.xpose.msra.mxu0 %v1956_v7  ;;  %v260_v6 = vld [vmem:[%s2571_s20 + $0x10] sm:$0xff] }
  0xb2   : > { %1443 = vmatprep.subr.bf16.mxu1 %v1963_v8  ;;  %1484 = vmatprep.subr.bf16.mxu0 %v1965_v9  ;;  %v264_v7 = vld [vmem:[%s2571_s20 + $0x30] sm:$0xff]  ;;  %v2018_v8 = vcombine.low %v378_v60, %v382_v61  ;;  %v2020_v9 = vcombine.low %v379_v62, %v383_v63  ;;  %v438_v60 = vld [vmem:[%s2571_s20 + $0x5a0] sm:$0xff] }
  0xb3   : > { %v1903_v11 = vcombine.high %v260_v6, %v264_v7  ;;  %v308_v61 = vld [vmem:[%s2571_s20 + $0x190] sm:$0xff] }
  0xb4   : > { %v312_v62 = vld [vmem:[%s2571_s20 + $0x1b0] sm:$0xff] }
  0xb9   : > { %1444 = vmatpush1.bf16.xpose.msra.mxu1 %v1962_v14  ;;  %1485 = vmatpush1.bf16.xpose.msra.mxu0 %v1964_v15  ;;  %v394_v14 = vld [vmem:[%s2571_s20 + $0x440] sm:$0xff] }
  0xba   : > { %1445 = vmatprep.subr.bf16.mxu1 %v1971_v16  ;;  %1486 = vmatprep.subr.bf16.mxu0 %v1973_v17  ;;  %v398_v15 = vld [vmem:[%s2571_s20 + $0x460] sm:$0xff]  ;;  %v2653_v16 = vpack.c.bf16 %v242_v12, %v242_v12  ;;  %v268_v17 = vld [vmem:[%s2571_s20 + $0x50] sm:$0xff]  ;;  %v391_v12 = vld [vmem:[%s2571_s20 + $0x428] sm:$0xff] }
  0xc1   : > { %1446 = vmatpush1.bf16.xpose.msra.mxu1 %v1970_v22  ;;  %1487 = vmatpush1.bf16.xpose.msra.mxu0 %v1972_v23  ;;  %v1902_v22 = vcombine.low %v260_v6, %v264_v7  ;;  %v2035_v23 = vcombine.high %v394_v14, %v398_v15  ;;  %v320_v6 = vld [vmem:[%s2571_s20 + $0x1f0] sm:$0xff] }
  0xc2   : > { %1447 = vmatprep.subr.bf16.mxu1 %v1979_v24  ;;  %1488 = vmatprep.subr.bf16.mxu0 %v1981_v25  ;;  %v1911_v24 = vcombine.high %v268_v17, %v272_v18  ;;  %v2660_v25 = vpack.c.bf16 %v247_v21, %v247_v21  ;;  %v395_v21 = vld [vmem:[%s2571_s20 + $0x448] sm:$0xff] }
  0xc9   : > { %1448 = vmatpush1.bf16.xpose.msra.mxu1 %v1978_v30  ;;  %1489 = vmatpush1.bf16.xpose.msra.mxu0 %v1980_v31  ;;  %v2034_v30 = vcombine.low %v394_v14, %v398_v15  ;;  %v1910_v31 = vcombine.low %v268_v17, %v272_v18  ;;  %v328_v14 = vld [vmem:[%s2571_s20 + $0x230] sm:$0xff]  ;;  %v1958_v17 = vcombine.low %v316_v5, %v320_v6 }
  0xca   : > { %1449 = vmatprep.subr.bf16.mxu1 %v1987_v32  ;;  %1490 = vmatprep.subr.bf16.mxu0 %v1989_v34  ;;  %v2043_v32 = vcombine.high %v402_v26, %v406_v27  ;;  %v1919_v34 = vcombine.high %v276_v28, %v280_v29  ;;  %v1966_v27 = vcombine.low %v324_v13, %v328_v14 }
  0xd1   : > { %1450 = vmatpush1.bf16.xpose.msra.mxu1 %v1986_v40  ;;  %1491 = vmatpush1.bf16.xpose.msra.mxu0 %v1988_v41  ;;  %v1918_v40 = vcombine.low %v276_v28, %v280_v29  ;;  %v2051_v41 = vcombine.high %v410_v35, %v414_v36 }
  0xd2   : > { %1451 = vmatprep.subr.bf16.mxu1 %v1995_v42  ;;  %1492 = vmatprep.subr.bf16.mxu0 %v1997_v43  ;;  %v418_v43 = vld [vmem:[%s2571_s20 + $0x500] sm:$0xff] }
  0xd3   : > { %v2058_v55 = vcombine.low %v418_v43, %v422_v44 }
  0xd9   : > { %1452 = vmatpush1.bf16.xpose.msra.mxu1 %v1994_v48  ;;  %1493 = vmatpush1.bf16.xpose.msra.mxu0 %v1996_v49  ;;  %v2059_v49 = vcombine.high %v418_v43, %v422_v44 }
  0xda   : > { %1453 = vmatprep.subr.bf16.mxu1 %v2003_v50  ;;  %1494 = vmatprep.subr.bf16.mxu0 %v2005_v51  ;;  %v1935_v50 = vcombine.high %v292_v45, %v296_v46  ;;  %v426_v51 = vld [vmem:[%s2571_s20 + $0x540] sm:$0xff] }
  0xdb   : > { %v2066_v63 = vcombine.low %v426_v51, %v430_v52 }
  0xe1   : > { %1454 = vmatpush1.bf16.xpose.msra.mxu1 %v2002_v56  ;;  %1495 = vmatpush1.bf16.xpose.msra.mxu0 %v2004_v57  ;;  %v1934_v56 = vcombine.low %v292_v45, %v296_v46  ;;  %v2067_v57 = vcombine.high %v426_v51, %v430_v52  ;;  %v419_v45 = vld [vmem:[%s2571_s20 + $0x508] sm:$0xff] }
  0xe2   : > { %1455 = vmatprep.subr.bf16.mxu1 %v2011_v58  ;;  %1496 = vmatprep.subr.bf16.mxu0 %v2013_v59  ;;  %v1943_v58 = vcombine.high %v300_v53, %v304_v54  ;;  %v434_v59 = vld [vmem:[%s2571_s20 + $0x580] sm:$0xff]  ;;  %v423_v46 = vld [vmem:[%s2571_s20 + $0x528] sm:$0xff] }
  0xe3   : > { %v2074_v7 = vcombine.low %v434_v59, %v438_v60  ;;  %v2061_v51 = vcombine.high %v419_v45, %v423_v46 }
  0xe9   : > { %1456 = vmatpush1.bf16.xpose.msra.mxu1 %v2010_v0  ;;  %1497 = vmatpush1.bf16.xpose.msra.mxu0 %v2012_v1  ;;  %v1942_v0 = vcombine.low %v300_v53, %v304_v54  ;;  %v2075_v1 = vcombine.high %v434_v59, %v438_v60  ;;  %v427_v53 = vld [vmem:[%s2571_s20 + $0x548] sm:$0xff] }
  0xea   : > { %1457 = vmatprep.subr.bf16.mxu1 %v2019_v2  ;;  %1498 = vmatprep.subr.bf16.mxu0 %v2021_v3  ;;  %v1951_v2 = vcombine.high %v308_v61, %v312_v62  ;;  %v442_v3 = vld [vmem:[%s2571_s20 + $0x5c0] sm:$0xff]  ;;  %v431_v54 = vld [vmem:[%s2571_s20 + $0x568] sm:$0xff] }
  0xeb   : > { %v2082_v15 = vcombine.low %v442_v3, %v446_v4  ;;  %v2069_v59 = vcombine.high %v427_v53, %v431_v54 }
  0xf1   : > { %1458 = vmatpush1.bf16.xpose.msra.mxu1 %v2018_v8  ;;  %1499 = vmatpush1.bf16.xpose.msra.mxu0 %v2020_v9  ;;  %v1950_v8 = vcombine.low %v308_v61, %v312_v62  ;;  %v2083_v9 = vcombine.high %v442_v3, %v446_v4  ;;  %v435_v61 = vld [vmem:[%s2571_s20 + $0x588] sm:$0xff] }
  0xf2   : > { %1591 = vmatprep.subr.bf16.mxu1 %v2027_v10  ;;  %1509 = vmatprep.subr.bf16.mxu0 %v1903_v11  ;;  %v1959_v10 = vcombine.high %v316_v5, %v320_v6  ;;  %v387_v11 = vld [vmem:[%s2571_s20 + $0x408] sm:$0xff] }
  0xf3   : > { %v2029_v18 = vcombine.high %v387_v11, %v391_v12  ;;  %v2028_v26 = vcombine.low %v387_v11, %v391_v12  ;;  %v439_v62 = vld [vmem:[%s2571_s20 + $0x5a8] sm:$0xff] }
  0xf4   : > { %v2077_v3 = vcombine.high %v435_v61, %v439_v62  ;;  %v443_v5 = vld [vmem:[%s2571_s20 + $0x5c8] sm:$0xff] }
  0xf5   : > { %v447_v6 = vld [vmem:[%s2571_s20 + $0x5e8] sm:$0xff] }
  0xf6   : > { %v2085_v11 = vcombine.high %v443_v5, %v447_v6 }
  0xf8   : > { %1460 = vmatmul.mubr.bf16.vlgmr.msra.gmra.mrb[0].mxu1 %v2653_v16  ;;  %1501 = vmatmul.mubr.bf16.vlgmr.msra.gmra.mrb[0].mxu0 %v2657_v20 }
  0xf9   : > { %1592 = vmatpush1.bf16.xpose.msra.mxu1 %v2026_v19  ;;  %1510 = vmatpush1.bf16.xpose.msra.mxu0 %v1902_v22  ;;  %v1967_v19 = vcombine.high %v324_v13, %v328_v14  ;;  %v399_v22 = vld [vmem:[%s2571_s20 + $0x468] sm:$0xff]  ;;  %v388_v13 = vld [vmem:[%s2571_s20 + $0x410] sm:$0xff] }
  0xfa   : > { %1593 = vmatprep.subr.bf16.mxu1 %v2035_v23  ;;  %1511 = vmatprep.subr.bf16.mxu0 %v1911_v24  ;;  %v332_v23 = vld [vmem:[%s2571_s20 + $0x250] sm:$0xff]  ;;  %v2037_v28 = vcombine.high %v395_v21, %v399_v22  ;;  %v2036_v35 = vcombine.low %v395_v21, %v399_v22 }
  0xfb   : > { %1623 = vmatprep.mubr.bf16.mxu1 %v2595_v33  ;;  %1541 = vmatprep.mubr.bf16.mxu0 %v2660_v25  ;;  %v288_v33 = vld [vmem:[%s2571_s20 + $0xf0] sm:$0xff] }
  0xfc   : > { %v1927_v42 = vcombine.high %v284_v38, %v288_v33  ;;  %v1926_v48 = vcombine.low %v284_v38, %v288_v33  ;;  %v336_v24 = vld [vmem:[%s2571_s20 + $0x270] sm:$0xff] }
  0xfd   : > { %v1975_v29 = vcombine.high %v332_v23, %v336_v24  ;;  %v1974_v36 = vcombine.low %v332_v23, %v336_v24  ;;  %v392_v14 = vld [vmem:[%s2571_s20 + $0x430] sm:$0xff]  ;;  %v246_v23 = vld [vmem:[#allocation2 + $0x20] sm:$0xff] }
  0xfe   : > { %v2031_v21 = vcombine.high %v388_v13, %v392_v14  ;;  %v396_v24 = vld [vmem:[%s2571_s20 + $0x450] sm:$0xff] }
 0x101   : > { %1594 = vmatpush1.bf16.xpose.msra.mxu1 %v2034_v30  ;;  %1512 = vmatpush1.bf16.xpose.msra.mxu0 %v1910_v31  ;;  %v403_v30 = vld [vmem:[%s2571_s20 + $0x488] sm:$0xff] }
 0x102   : > { %1595 = vmatprep.subr.bf16.mxu1 %v2043_v32  ;;  %1513 = vmatprep.subr.bf16.mxu0 %v1919_v34  ;;  %v407_v31 = vld [vmem:[%s2571_s20 + $0x4a8] sm:$0xff]  ;;  %v340_v32 = vld [vmem:[%s2571_s20 + $0x290] sm:$0xff] }
 0x103   : > { %v344_v34 = vld [vmem:[%s2571_s20 + $0x2b0] sm:$0xff]  ;;  %v2045_v38 = vcombine.high %v403_v30, %v407_v31 }
 0x104   : > { %v1983_v33 = vcombine.high %v340_v32, %v344_v34 }
 0x109   : > { %1596 = vmatpush1.bf16.xpose.msra.mxu1 %v2042_v39  ;;  %1514 = vmatpush1.bf16.xpose.msra.mxu0 %v1918_v40  ;;  %v348_v39 = vld [vmem:[%s2571_s20 + $0x2d0] sm:$0xff] }
 0x10a   : > { %1597 = vmatprep.subr.bf16.mxu1 %v2051_v41  ;;  %1515 = vmatprep.subr.bf16.mxu0 %v1927_v42  ;;  %v352_v40 = vld [vmem:[%s2571_s20 + $0x2f0] sm:$0xff]  ;;  %v2044_v41 = vcombine.low %v403_v30, %v407_v31  ;;  %v1982_v42 = vcombine.low %v340_v32, %v344_v34  ;;  %v2731_v30 = vpack.c.bf16 %v246_v23, %v246_v23  ;;  %v249_v31 = vld [vmem:[#allocation2 + $0x38] sm:$0xff] }
 0x10b   : > { %v1991_v44 = vcombine.high %v348_v39, %v352_v40 }
 0x111   : > { %1598 = vmatpush1.bf16.xpose.msra.mxu1 %v2050_v47  ;;  %1516 = vmatpush1.bf16.xpose.msra.mxu0 %v1926_v48  ;;  %v356_v47 = vld [vmem:[%s2571_s20 + $0x310] sm:$0xff] }
 0x112   : > { %1599 = vmatprep.subr.bf16.mxu1 %v2059_v49  ;;  %1517 = vmatprep.subr.bf16.mxu0 %v1935_v50  ;;  %v360_v48 = vld [vmem:[%s2571_s20 + $0x330] sm:$0xff]  ;;  %v1990_v50 = vcombine.low %v348_v39, %v352_v40 }
 0x113   : > { %v1999_v52 = vcombine.high %v356_v47, %v360_v48 }
 0x119   : > { %1600 = vmatpush1.bf16.xpose.msra.mxu1 %v2058_v55  ;;  %1518 = vmatpush1.bf16.xpose.msra.mxu0 %v1934_v56  ;;  %v364_v55 = vld [vmem:[%s2571_s20 + $0x350] sm:$0xff] }
 0x11a   : > { %1601 = vmatprep.subr.bf16.mxu1 %v2067_v57  ;;  %1519 = vmatprep.subr.bf16.mxu0 %v1943_v58  ;;  %v368_v56 = vld [vmem:[%s2571_s20 + $0x370] sm:$0xff]  ;;  %v2060_v57 = vcombine.low %v419_v45, %v423_v46  ;;  %v1998_v58 = vcombine.low %v356_v47, %v360_v48 }
 0x11b   : > { %v2007_v60 = vcombine.high %v364_v55, %v368_v56 }
 0x121   : > { %1602 = vmatpush1.bf16.xpose.msra.mxu1 %v2066_v63  ;;  %1520 = vmatpush1.bf16.xpose.msra.mxu0 %v1942_v0  ;;  %v372_v63 = vld [vmem:[%s2571_s20 + $0x390] sm:$0xff] }
 0x122   : > { %1603 = vmatprep.subr.bf16.mxu1 %v2075_v1  ;;  %1521 = vmatprep.subr.bf16.mxu0 %v1951_v2  ;;  %v376_v0 = vld [vmem:[%s2571_s20 + $0x3b0] sm:$0xff]  ;;  %v2068_v1 = vcombine.low %v427_v53, %v431_v54  ;;  %v2006_v2 = vcombine.low %v364_v55, %v368_v56 }
 0x123   : > { %v2015_v4 = vcombine.high %v372_v63, %v376_v0 }
 0x129   : > { %1604 = vmatpush1.bf16.xpose.msra.mxu1 %v2074_v7  ;;  %1522 = vmatpush1.bf16.xpose.msra.mxu0 %v1950_v8  ;;  %v380_v7 = vld [vmem:[%s2571_s20 + $0x3d0] sm:$0xff] }
 0x12a   : > { %1605 = vmatprep.subr.bf16.mxu1 %v2083_v9  ;;  %1523 = vmatprep.subr.bf16.mxu0 %v1959_v10  ;;  %v384_v8 = vld [vmem:[%s2571_s20 + $0x3f0] sm:$0xff]  ;;  %v2076_v9 = vcombine.low %v435_v61, %v439_v62  ;;  %v2014_v10 = vcombine.low %v372_v63, %v376_v0 }
 0x12b   : > { %v2023_v12 = vcombine.high %v380_v7, %v384_v8 }
 0x131   : > { %1606 = vmatpush1.bf16.xpose.msra.mxu1 %v2082_v15  ;;  %1524 = vmatpush1.bf16.xpose.msra.mxu0 %v1958_v17  ;;  %v261_v15 = vld [vmem:[%s2571_s20 + $0x18] sm:$0xff] }
 0x132   : > { %1631 = vmatprep.subr.bf16.mxu1 %v2029_v18  ;;  %1525 = vmatprep.subr.bf16.mxu0 %v1967_v19  ;;  %v265_v17 = vld [vmem:[%s2571_s20 + $0x38] sm:$0xff]  ;;  %v2084_v18 = vcombine.low %v443_v5, %v447_v6  ;;  %v2022_v19 = vcombine.low %v380_v7, %v384_v8 }
 0x133   : > { %v1905_v22 = vcombine.high %v261_v15, %v265_v17  ;;  %v1904_v32 = vcombine.low %v261_v15, %v265_v17 }
 0x138   : > { %1624 = vmatmul.mubr.bf16.vlgmr.msra.gmra.mrb[4].mxu1 %v2653_v16  ;;  %v415_v16 = vld [vmem:[%s2571_s20 + $0x4e8] sm:$0xff] }
 0x139   : > { %1632 = vmatpush1.bf16.xpose.msra.mxu1 %v2028_v26  ;;  %1663 = vmatprep.mubr.bf16.mxu1 %v2599_v37  ;;  %v411_v37 = vld [vmem:[%s2571_s20 + $0x4c8] sm:$0xff]  ;;  %v400_v26 = vld [vmem:[%s2571_s20 + $0x470] sm:$0xff] }
 0x13a   : > { %1526 = vmatpush1.bf16.xpose.msra.mxu0 %v1966_v27  ;;  %1633 = vmatprep.subr.bf16.mxu1 %v2037_v28  ;;  %v2053_v43 = vcombine.high %v411_v37, %v415_v16  ;;  %v2052_v49 = vcombine.low %v411_v37, %v415_v16  ;;  %v269_v27 = vld [vmem:[%s2571_s20 + $0x58] sm:$0xff]  ;;  %v2039_v34 = vcombine.high %v396_v24, %v400_v26 }
 0x13b   : > { %1527 = vmatprep.subr.bf16.mxu0 %v1975_v29  ;;  %v273_v28 = vld [vmem:[%s2571_s20 + $0x78] sm:$0xff]  ;;  %v2030_v29 = vcombine.low %v388_v13, %v392_v14 }
 0x13c   : > { %v277_v37 = vld [vmem:[%s2571_s20 + $0x98] sm:$0xff]  ;;  %v1912_v39 = vcombine.low %v269_v27, %v273_v28 }
 0x13d   : > { %v281_v16 = vld [vmem:[%s2571_s20 + $0xb8] sm:$0xff] }
 0x13e   : > { %v1920_v46 = vcombine.low %v277_v37, %v281_v16 }
 0x141   : > { %1634 = vmatpush1.bf16.xpose.msra.mxu1 %v2036_v35  ;;  %v1913_v35 = vcombine.high %v269_v27, %v273_v28  ;;  %v397_v28 = vld [vmem:[%s2571_s20 + $0x458] sm:$0xff] }
 0x142   : > { %1528 = vmatpush1.bf16.xpose.msra.mxu0 %v1974_v36  ;;  %1635 = vmatprep.subr.bf16.mxu1 %v2045_v38  ;;  %v2734_v36 = vpack.c.bf16 %v249_v31, %v249_v31  ;;  %v404_v38 = vld [vmem:[%s2571_s20 + $0x490] sm:$0xff]  ;;  %v333_v31 = vld [vmem:[%s2571_s20 + $0x258] sm:$0xff] }
 0x143   : > { %1529 = vmatprep.subr.bf16.mxu0 %v1983_v33  ;;  %v408_v33 = vld [vmem:[%s2571_s20 + $0x4b0] sm:$0xff] }
 0x144   : > { %v2047_v40 = vcombine.high %v404_v38, %v408_v33  ;;  %v2046_v45 = vcombine.low %v404_v38, %v408_v33 }
 0x149   : > { %1636 = vmatpush1.bf16.xpose.msra.mxu1 %v2044_v41  ;;  %v1921_v41 = vcombine.high %v277_v37, %v281_v16  ;;  %v405_v37 = vld [vmem:[%s2571_s20 + $0x498] sm:$0xff] }
 0x14a   : > { %1530 = vmatpush1.bf16.xpose.msra.mxu0 %v1982_v42  ;;  %1637 = vmatprep.subr.bf16.mxu1 %v2053_v43  ;;  %v412_v42 = vld [vmem:[%s2571_s20 + $0x4d0] sm:$0xff]  ;;  %v409_v16 = vld [vmem:[%s2571_s20 + $0x4b8] sm:$0xff] }
 0x14b   : > { %1531 = vmatprep.subr.bf16.mxu0 %v1991_v44  ;;  %v416_v43 = vld [vmem:[%s2571_s20 + $0x4f0] sm:$0xff]  ;;  %v285_v44 = vld [vmem:[%s2571_s20 + $0xd8] sm:$0xff] }
 0x14c   : > { %v2055_v47 = vcombine.high %v412_v42, %v416_v43  ;;  %v2054_v53 = vcombine.low %v412_v42, %v416_v43  ;;  %v2049_v42 = vcombine.high %v405_v37, %v409_v16 }
 0x151   : > { %1638 = vmatpush1.bf16.xpose.msra.mxu1 %v2052_v49  ;;  %v420_v49 = vld [vmem:[%s2571_s20 + $0x510] sm:$0xff] }
 0x152   : > { %1532 = vmatpush1.bf16.xpose.msra.mxu0 %v1990_v50  ;;  %1639 = vmatprep.subr.bf16.mxu1 %v2061_v51  ;;  %v424_v50 = vld [vmem:[%s2571_s20 + $0x530] sm:$0xff]  ;;  %v293_v51 = vld [vmem:[%s2571_s20 + $0x118] sm:$0xff] }
 0x153   : > { %1533 = vmatprep.subr.bf16.mxu0 %v1999_v52  ;;  %v297_v52 = vld [vmem:[%s2571_s20 + $0x138] sm:$0xff]  ;;  %v2063_v55 = vcombine.high %v420_v49, %v424_v50  ;;  %v2062_v61 = vcombine.low %v420_v49, %v424_v50 }
 0x154   : > { %v1937_v56 = vcombine.high %v293_v51, %v297_v52  ;;  %v1936_v62 = vcombine.low %v293_v51, %v297_v52  ;;  %v421_v50 = vld [vmem:[%s2571_s20 + $0x518] sm:$0xff] }
 0x155   : > { %v425_v51 = vld [vmem:[%s2571_s20 + $0x538] sm:$0xff] }
 0x159   : > { %1640 = vmatpush1.bf16.xpose.msra.mxu1 %v2060_v57  ;;  %v428_v57 = vld [vmem:[%s2571_s20 + $0x550] sm:$0xff] }
 0x15a   : > { %1534 = vmatpush1.bf16.xpose.msra.mxu0 %v1998_v58  ;;  %1641 = vmatprep.subr.bf16.mxu1 %v2069_v59  ;;  %v432_v58 = vld [vmem:[%s2571_s20 + $0x570] sm:$0xff]  ;;  %v301_v59 = vld [vmem:[%s2571_s20 + $0x158] sm:$0xff] }
 0x15b   : > { %1535 = vmatprep.subr.bf16.mxu0 %v2007_v60  ;;  %v305_v60 = vld [vmem:[%s2571_s20 + $0x178] sm:$0xff]  ;;  %v2071_v63 = vcombine.high %v428_v57, %v432_v58  ;;  %v2070_v5 = vcombine.low %v428_v57, %v432_v58 }
 0x15c   : > { %v1945_v0 = vcombine.high %v301_v59, %v305_v60  ;;  %v1944_v6 = vcombine.low %v301_v59, %v305_v60  ;;  %v2065_v59 = vcombine.high %v421_v50, %v425_v51 }
 0x161   : > { %1642 = vmatpush1.bf16.xpose.msra.mxu1 %v2068_v1  ;;  %v436_v1 = vld [vmem:[%s2571_s20 + $0x590] sm:$0xff] }
 0x162   : > { %1536 = vmatpush1.bf16.xpose.msra.mxu0 %v2006_v2  ;;  %1643 = vmatprep.subr.bf16.mxu1 %v2077_v3  ;;  %v440_v2 = vld [vmem:[%s2571_s20 + $0x5b0] sm:$0xff]  ;;  %v309_v3 = vld [vmem:[%s2571_s20 + $0x198] sm:$0xff] }
 0x163   : > { %1537 = vmatprep.subr.bf16.mxu0 %v2015_v4  ;;  %v313_v4 = vld [vmem:[%s2571_s20 + $0x1b8] sm:$0xff]  ;;  %v2079_v7 = vcombine.high %v436_v1, %v440_v2  ;;  %v2078_v13 = vcombine.low %v436_v1, %v440_v2  ;;  %v2064_v1 = vcombine.low %v421_v50, %v425_v51 }
 0x164   : > { %v1953_v8 = vcombine.high %v309_v3, %v313_v4  ;;  %v1952_v14 = vcombine.low %v309_v3, %v313_v4 }
 0x169   : > { %1644 = vmatpush1.bf16.xpose.msra.mxu1 %v2076_v9  ;;  %v444_v9 = vld [vmem:[%s2571_s20 + $0x5d0] sm:$0xff] }
 0x16a   : > { %1538 = vmatpush1.bf16.xpose.msra.mxu0 %v2014_v10  ;;  %1645 = vmatprep.subr.bf16.mxu1 %v2085_v11  ;;  %v448_v10 = vld [vmem:[%s2571_s20 + $0x5f0] sm:$0xff]  ;;  %v317_v11 = vld [vmem:[%s2571_s20 + $0x1d8] sm:$0xff] }
 0x16b   : > { %1539 = vmatprep.subr.bf16.mxu0 %v2023_v12  ;;  %v321_v12 = vld [vmem:[%s2571_s20 + $0x1f8] sm:$0xff]  ;;  %v2087_v15 = vcombine.high %v444_v9, %v448_v10  ;;  %v2086_v23 = vcombine.low %v444_v9, %v448_v10 }
 0x16c   : > { %v1961_v17 = vcombine.high %v317_v11, %v321_v12 }
 0x171   : > { %1646 = vmatpush1.bf16.xpose.msra.mxu1 %v2084_v18  ;;  %v389_v18 = vld [vmem:[%s2571_s20 + $0x418] sm:$0xff] }
 0x172   : > { %1540 = vmatpush1.bf16.xpose.msra.mxu0 %v2022_v19  ;;  %1671 = vmatprep.subr.bf16.mxu1 %v2031_v21  ;;  %v393_v19 = vld [vmem:[%s2571_s20 + $0x438] sm:$0xff] }
 0x173   : > { %1550 = vmatprep.subr.bf16.mxu0 %v1905_v22  ;;  %v325_v21 = vld [vmem:[%s2571_s20 + $0x218] sm:$0xff] }
 0x174   : > { %v329_v22 = vld [vmem:[%s2571_s20 + $0x238] sm:$0xff] }
 0x175   : > { %v1969_v27 = vcombine.high %v325_v21, %v329_v22 }
 0x178   : > { %1664 = vmatmul.mubr.bf16.vlgmr.msra.gmra.mrb[4].mxu1 %v2657_v20  ;;  %v2038_v20 = vcombine.low %v396_v24, %v400_v26  ;;  %v1960_v24 = vcombine.low %v317_v11, %v321_v12  ;;  %v2033_v26 = vcombine.high %v389_v18, %v393_v19 }
 0x179   : > { %1542 = vmatmul.mubr.bf16.vlgmr.msra.gmra.mrb[0].mxu0 %v2731_v30  ;;  %1672 = vmatpush1.bf16.xpose.msra.mxu1 %v2030_v29  ;;  %v401_v29 = vld [vmem:[%s2571_s20 + $0x478] sm:$0xff] }
 0x17a   : > { %1551 = vmatpush1.bf16.xpose.msra.mxu0 %v1904_v32  ;;  %1673 = vmatprep.subr.bf16.mxu1 %v2039_v34  ;;  %v337_v32 = vld [vmem:[%s2571_s20 + $0x278] sm:$0xff]  ;;  %v2032_v34 = vcombine.low %v389_v18, %v393_v19  ;;  %v2041_v38 = vcombine.high %v397_v28, %v401_v29 }
 0x17b   : > { %1552 = vmatprep.subr.bf16.mxu0 %v1913_v35  ;;  %1703 = vmatprep.mubr.bf16.mxu1 %v2660_v25  ;;  %v289_v25 = vld [vmem:[%s2571_s20 + $0xf8] sm:$0xff]  ;;  %v1968_v35 = vcombine.low %v325_v21, %v329_v22  ;;  %v1977_v33 = vcombine.high %v333_v31, %v337_v32 }
 0x17c   : > { %1582 = vmatprep.mubr.bf16.mxu0 %v2734_v36  ;;  %v1929_v48 = vcombine.high %v285_v44, %v289_v25  ;;  %v1928_v54 = vcombine.low %v285_v44, %v289_v25  ;;  %v349_v44 = vld [vmem:[%s2571_s20 + $0x2d8] sm:$0xff] }
 0x17d   : > { %v353_v25 = vld [vmem:[%s2571_s20 + $0x2f8] sm:$0xff] }
 0x17e   : > { %v1992_v58 = vcombine.low %v349_v44, %v353_v25 }
 0x181   : > { %1674 = vmatpush1.bf16.xpose.msra.mxu1 %v2038_v20  ;;  %v341_v20 = vld [vmem:[%s2571_s20 + $0x298] sm:$0xff] }
 0x182   : > { %1553 = vmatpush1.bf16.xpose.msra.mxu0 %v1912_v39  ;;  %1675 = vmatprep.subr.bf16.mxu1 %v2047_v40  ;;  %v345_v39 = vld [vmem:[%s2571_s20 + $0x2b8] sm:$0xff]  ;;  %v2040_v40 = vcombine.low %v397_v28, %v401_v29  ;;  %v452_v28 = vlaneseq }
 0x183   : > { %1554 = vmatprep.subr.bf16.mxu0 %v1921_v41  ;;  %v1976_v41 = vcombine.low %v333_v31, %v337_v32  ;;  %v1985_v43 = vcombine.high %v341_v20, %v345_v39  ;;  %v450_v32 = vld [vmem:[%s210_s26] sm:$0x7] }
 0x184   : > { %v453_v29 = vshrl.u32 %v452_v28, 7 }
 0x186   : > { %v454_v31 = vsub.s32 0, %v453_v29 }
 0x189   : > { %1676 = vmatpush1.bf16.xpose.msra.mxu1 %v2046_v45  ;;  %v2048_v45 = vcombine.low %v405_v37, %v409_v16 }
 0x18a   : > { %1555 = vmatpush1.bf16.xpose.msra.mxu0 %v1920_v46  ;;  %1677 = vmatprep.subr.bf16.mxu1 %v2055_v47  ;;  %v1984_v46 = vcombine.low %v341_v20, %v345_v39 }
 0x18b   : > { %1556 = vmatprep.subr.bf16.mxu0 %v1929_v48  ;;  %v1993_v48 = vcombine.high %v349_v44, %v353_v25 }
 0x191   : > { %1678 = vmatpush1.bf16.xpose.msra.mxu1 %v2054_v53  ;;  %v357_v53 = vld [vmem:[%s2571_s20 + $0x318] sm:$0xff] }
 0x192   : > { %1557 = vmatpush1.bf16.xpose.msra.mxu0 %v1928_v54  ;;  %1679 = vmatprep.subr.bf16.mxu1 %v2063_v55  ;;  %v361_v54 = vld [vmem:[%s2571_s20 + $0x338] sm:$0xff] }
 0x193   : > { %1558 = vmatprep.subr.bf16.mxu0 %v1937_v56  ;;  %v2001_v60 = vcombine.high %v357_v53, %v361_v54  ;;  %v2000_v2 = vcombine.low %v357_v53, %v361_v54 }
 0x199   : > { %1680 = vmatpush1.bf16.xpose.msra.mxu1 %v2062_v61  ;;  %v429_v61 = vld [vmem:[%s2571_s20 + $0x558] sm:$0xff] }
 0x19a   : > { %1559 = vmatpush1.bf16.xpose.msra.mxu0 %v1936_v62  ;;  %1681 = vmatprep.subr.bf16.mxu1 %v2071_v63  ;;  %v433_v62 = vld [vmem:[%s2571_s20 + $0x578] sm:$0xff] }
 0x19b   : > { %1560 = vmatprep.subr.bf16.mxu0 %v1945_v0  ;;  %v365_v63 = vld [vmem:[%s2571_s20 + $0x358] sm:$0xff]  ;;  %v2073_v3 = vcombine.high %v429_v61, %v433_v62  ;;  %v2072_v9 = vcombine.low %v429_v61, %v433_v62 }
 0x19c   : > { %v369_v0 = vld [vmem:[%s2571_s20 + $0x378] sm:$0xff] }
 0x19d   : > { %v2009_v4 = vcombine.high %v365_v63, %v369_v0  ;;  %v2008_v10 = vcombine.low %v365_v63, %v369_v0 }
 0x1a1   : > { %1682 = vmatpush1.bf16.xpose.msra.mxu1 %v2070_v5  ;;  %v437_v5 = vld [vmem:[%s2571_s20 + $0x598] sm:$0xff] }
 0x1a2   : > { %1561 = vmatpush1.bf16.xpose.msra.mxu0 %v1944_v6  ;;  %1683 = vmatprep.subr.bf16.mxu1 %v2079_v7  ;;  %v441_v6 = vld [vmem:[%s2571_s20 + $0x5b8] sm:$0xff] }
 0x1a3   : > { %1562 = vmatprep.subr.bf16.mxu0 %v1953_v8  ;;  %v373_v7 = vld [vmem:[%s2571_s20 + $0x398] sm:$0xff]  ;;  %v2081_v11 = vcombine.high %v437_v5, %v441_v6  ;;  %v2080_v18 = vcombine.low %v437_v5, %v441_v6 }
 0x1a4   : > { %v377_v8 = vld [vmem:[%s2571_s20 + $0x3b8] sm:$0xff] }
 0x1a5   : > { %v2017_v12 = vcombine.high %v373_v7, %v377_v8  ;;  %v2016_v19 = vcombine.low %v373_v7, %v377_v8 }
 0x1a9   : > { %1684 = vmatpush1.bf16.xpose.msra.mxu1 %v2078_v13  ;;  %v445_v13 = vld [vmem:[%s2571_s20 + $0x5d8] sm:$0xff] }
 0x1aa   : > { %1563 = vmatpush1.bf16.xpose.msra.mxu0 %v1952_v14  ;;  %1685 = vmatprep.subr.bf16.mxu1 %v2087_v15  ;;  %v449_v14 = vld [vmem:[%s2571_s20 + $0x5f8] sm:$0xff] }
 0x1ab   : > { %1564 = vmatprep.subr.bf16.mxu0 %v1961_v17  ;;  %v381_v15 = vld [vmem:[%s2571_s20 + $0x3d8] sm:$0xff]  ;;  %v2089_v21 = vcombine.high %v445_v13, %v449_v14 }
 0x1ac   : > { %v385_v17 = vld [vmem:[%s2571_s20 + $0x3f8] sm:$0xff] }
 0x1ad   : > { %v2025_v22 = vcombine.high %v381_v15, %v385_v17 }
 0x1b1   : > { %1686 = vmatpush1.bf16.xpose.msra.mxu1 %v2086_v23  ;;  %v2088_v23 = vcombine.low %v445_v13, %v449_v14 }
 0x1b2   : > { %1565 = vmatpush1.bf16.xpose.msra.mxu0 %v1960_v24  ;;  %1711 = vmatprep.subr.bf16.mxu1 %v2033_v26  ;;  %v2024_v24 = vcombine.low %v381_v15, %v385_v17  ;;  %v248_v26 = vld [vmem:[#allocation2 + $0x30] sm:$0xff] }
 0x1b3   : > { %1566 = vmatprep.subr.bf16.mxu0 %v1969_v27  ;;  %v256_v27 = vpack.c.bf16 %v248_v26, %v248_v26 }
 0x1b8   : > { %1704 = vmatmul.mubr.bf16.vlgmr.msra.gmra.mrb[4].mxu1 %v2731_v30  ;;  %v413_v30 = vld [vmem:[%s2571_s20 + $0x4d8] sm:$0xff] }
 0x1b9   : > { %1712 = vmatpush1.bf16.xpose.msra.mxu1 %v2032_v34  ;;  %1743 = vmatprep.mubr.bf16.mxu1 %v2734_v36  ;;  %v417_v36 = vld [vmem:[%s2571_s20 + $0x4f8] sm:$0xff]  ;;  %v458_v34 = vsub.s32 1, %v453_v29 }
 0x1ba   : > { %1567 = vmatpush1.bf16.xpose.msra.mxu0 %v1968_v35  ;;  %1713 = vmatprep.subr.bf16.mxu1 %v2041_v38  ;;  %v2057_v47 = vcombine.high %v413_v30, %v417_v36  ;;  %v2056_v56 = vcombine.low %v413_v30, %v417_v36  ;;  %v462_v35 = vsub.s32 2, %v453_v29  ;;  %v455_v38 = vrot.slane %v450_v32, %v454_v31 }
 0x1bb   : > { %1568 = vmatprep.subr.bf16.mxu0 %v1977_v33  ;;  %v459_v33 = vrot.slane %v450_v32, %v458_v34 }
 0x1bc   : > { %v463_v37 = vrot.slane %v450_v32, %v462_v35 }
 0x1c1   : > { %1714 = vmatpush1.bf16.xpose.msra.mxu1 %v2040_v40 }
 0x1c2   : > { %1569 = vmatpush1.bf16.xpose.msra.mxu0 %v1976_v41  ;;  %1715 = vmatprep.subr.bf16.mxu1 %v2049_v42 }
 0x1c3   : > { %1570 = vmatprep.subr.bf16.mxu0 %v1985_v43 }
 0x1c9   : > { %1716 = vmatpush1.bf16.xpose.msra.mxu1 %v2048_v45 }
 0x1ca   : > { %1571 = vmatpush1.bf16.xpose.msra.mxu0 %v1984_v46  ;;  %1717 = vmatprep.subr.bf16.mxu1 %v2057_v47 }
 0x1cb   : > { %v2781_v49 = vpop.f32.mrb[0].mxu1  ;;  %1572 = vmatprep.subr.bf16.mxu0 %v1993_v48 }
 0x1cc   : > { %v2785_v52 = vpop.f32.mrb[1].mxu1  ;;  %v1462_v16 = vadd.f32 %v2781_v49, %v455_v38 }
 0x1cd   : > { %v1465_v55 = vpop.f32.mrb[2].mxu1  ;;  %v1464_v39 = vadd.f32 %v2785_v52, %v459_v33 }
 0x1ce   : > { %v1466_v57 = vpop.f32.mrb[3].mxu1 }
 0x1d1   : > { %1718 = vmatpush1.bf16.xpose.msra.mxu1 %v2056_v56 }
 0x1d2   : > { %1573 = vmatpush1.bf16.xpose.msra.mxu0 %v1992_v58  ;;  %1719 = vmatprep.subr.bf16.mxu1 %v2065_v59 }
 0x1d3   : > { %1574 = vmatprep.subr.bf16.mxu0 %v2001_v60 }
 0x1d9   : > { %1720 = vmatpush1.bf16.xpose.msra.mxu1 %v2064_v1 }
 0x1da   : > { %1575 = vmatpush1.bf16.xpose.msra.mxu0 %v2000_v2  ;;  %1721 = vmatprep.subr.bf16.mxu1 %v2073_v3 }
 0x1db   : > { %1576 = vmatprep.subr.bf16.mxu0 %v2009_v4 }
 0x1e1   : > { %1722 = vmatpush1.bf16.xpose.msra.mxu1 %v2072_v9 }
 0x1e2   : > { %1577 = vmatpush1.bf16.xpose.msra.mxu0 %v2008_v10  ;;  %1723 = vmatprep.subr.bf16.mxu1 %v2081_v11 }
 0x1e3   : > { %1578 = vmatprep.subr.bf16.mxu0 %v2017_v12 }
 0x1e9   : > { %1724 = vmatpush1.bf16.xpose.msra.mxu1 %v2080_v18 }
 0x1ea   : > { %1579 = vmatpush1.bf16.xpose.msra.mxu0 %v2016_v19  ;;  %1725 = vmatprep.subr.bf16.mxu1 %v2089_v21 }
 0x1eb   : > { %1580 = vmatprep.subr.bf16.mxu0 %v2025_v22 }
 0x1f1   : > { %1726 = vmatpush1.bf16.xpose.msra.mxu1 %v2088_v23 }
 0x1f2   : > { %1581 = vmatpush1.bf16.xpose.msra.mxu0 %v2024_v24 }
 0x1f8   : > { %1744 = vmatmul.mubr.bf16.vlgmr.msra.gmra.mrb[4].mxu1 %v256_v27 }
 0x1f9   : > { %1583 = vmatmul.mubr.bf16.vlgmr.msra.gmra.mrb[0].mxu0 %v256_v27 }
 0x2cb   : > { %v1745_v20 = vpop.f32.mrb[4].mxu1 }
 0x2cc   : > { %v1584_v40 = vpop.f32.mrb[0].mxu0  ;;  %v2102_v41 = vadd.f32 %v1745_v20, %v463_v37  ;;  %v1747_v42 = vpop.f32.mrb[5].mxu1 }
 0x2cd   : > { %v2099_v43 = vadd.f32 %v1584_v40, %v1462_v16  ;;  %v1586_v30 = vpop.f32.mrb[1].mxu0  ;;  %v1748_v36 = vpop.f32.mrb[6].mxu1 }
 0x2ce   : > { %v1753_v44 = vsub.f32 0.0, %v2102_v41  ;;  %v2101_v25 = vadd.f32 %v1586_v30, %v1464_v39  ;;  %v1588_v45 = vpop.f32.mrb[2].mxu0  ;;  %v1749_v46 = vpop.f32.mrb[7].mxu1 }
 0x2cf   : > { %v1751_v47 = vsub.f32 0.0, %v2099_v43  ;;  %v1589_v48 = vpop.f32.mrb[3].mxu0 }
 0x2d0   : > { %v1758_v50 = vmul.f32 1.442695, %v1753_v44  ;;  %v1752_v51 = vsub.f32 0.0, %v2101_v25 }
 0x2d1   : > { %v1754_v49 = vmul.f32 1.442695, %v1751_v47 }
 0x2d2   : > { %2192 = vpow2.f32 %v1758_v50  ;;  %v1756_v53 = vmul.f32 1.442695, %v1752_v51 }
 0x2d3   : > { %2194 = vpow2.f32 %v1754_v49 }
 0x2d4   : > { %2196 = vpow2.f32 %v1756_v53 }
 0x2dc   : > { %v2193_v52 = vpop.eup %2192 }
 0x2dd   : > { %v2195_v54 = vpop.eup %2194  ;;  %v1762_v55 = vadd.f32 1.0, %v2193_v52 }
 0x2de   : > { %v2197_v56 = vpop.eup %2196  ;;  %v1760_v57 = vadd.f32 1.0, %v2195_v54 }
 0x2df   : > { %2198 = vrcp.f32 %v1762_v55  ;;  %v1761_v58 = vadd.f32 1.0, %v2197_v56 }
 0x2e0   : > { %2200 = vrcp.f32 %v1760_v57 }
 0x2e1   : > { %2202 = vrcp.f32 %v1761_v58 }
 0x2e9   : > { %v2199_v59 = vpop.eup %2198 }
 0x2ea   : > { %v2201_v60 = vpop.eup %2200  ;;  %1771 = vst [vmem:[%s237_s17 + $0x10] sm:$0xff] %v2199_v59 }
 0x2eb   : > { %v2203_v61 = vpop.eup %2202  ;;  %1769 = vst [vmem:[%s237_s17] sm:$0xff] %v2201_v60 }
 0x2ec   : > { %1770 = vst [vmem:[%s237_s17 + $0x8] sm:$0xff] %v2203_v61 }
 0x2ed   : > { %2305 = shalt.err (!%p2302_p1)
}
 0x2ee   : > { %s2306_s11 = scalar_lea.hbm %s2809_s29, 384  ;;  %s2310_s18 = scalar_lea.hbm %s2856_s3, 768 }
 0x2ef   : > { %p2307_p6 = scmp.ne.s32.totalorder %s2809_s29, %s2306_s11  ;;  %p2311_p7 = scmp.lt.u32.totalorder %s2809_s29, %s2856_s3 }
 0x2f0   : > { %p2312_p9 = scmp.lt.u32.totalorder %s2310_s18, %s2306_s11  ;;  %p2314_p12 = scmp.lt.u32.totalorder %s2306_s11, %s2809_s29 }
 0x2f1   : > { %p2308_p4 = pnand %p2307_p6, %p2877_p5 }
 0x2f2   : > { %p2313_p10 = por %p2312_p9, %p2311_p7 }
 0x2f3   : > { %p2309_p2 = pneg %p2308_p4 }
 0x2f4   : > { %p2315_p0 = por %p2314_p12, %p2313_p10 }
 0x2f6   : > { %p2316_p11 = pnand %p2315_p0, %p2309_p2 }
 0x2f8   : > { %2319 = shalt.err (!%p2316_p11)
}
 0x2f9   : > { %2136 = dma.vmem_to_hbm [thread:$0]  (%p2877_p5), %s2811_s22, 384, %s2809_s29, %s1773_s6  }
 0x2fa PF: > { %s1799_s26 = sand.u32 1, %s2350_s12   ;;  %p2878_p13 = scmp.ne.s32.totalorder %s2867_s28, 0 }
 0x2fb   : > { %p2879_p3 = scmp.ge.s32.totalorder %s2362_s15, 2  ;;  %s1800_s4 = scalar_lea.sflag [#allocation4], %s1799_s26 }
 0x2fd   : > { %p2150_p8 = pnand %p2879_p3, %p2878_p13 }
 0x2ff   : > { %2345 = dma.done.wait (!%p2150_p8), %s1800_s4, 384  }
 0x300   : > { %2347 = vsyncadd (!%p2150_p8), %s1800_s4, 4294966912  ;;  %p17_p1 = scmp.ge.s32.totalorder %s2411_s16, 4   ;;  %s2880_s12 = smov %s2354_s13 }
 0x301   : > { %s2881_s13 = smov %s2358_s14  ;;  %s2882_s14 = smov %s2422_s19 }
 0x302   : > { %s2883_s15 = smov %s2411_s16  ;;  %19 = sbr.rel (!%p17_p1) target bundleno = 6 (0x6), region = 93 }
 0x309   :  { %1805 = vsyncpa [#allocation3], 1 }
 0x30a   :  { %1807 = vsyncpa [#allocation3 + $0x1], 1 }
 0x30b   :  { %1808 = vsyncpa [#allocation6], 1 }
 0x30c   :  { %1810 = vsyncpa [#allocation6 + $0x1], 1 }
 0x30d   :  { %1811 = vsyncpa [#allocation4], 1 }
 0x30e   :  { %1813 = vsyncpa [#allocation4 + $0x1], 1 }

</bundles_post_ra>
